<compile_context>
chip_gen: v7x
topology: tpu7x:2x2x1
jax: 0.10.0
libtpu: 0.0.40
codegen_flags: <defaults>
</compile_context>

<pallas_src>
import math
import functools

import jax
import jax.numpy as jnp
from jax.experimental import pallas as pl
from jax.experimental.pallas import tpu as pltpu


def get_padding(kernel_size, dilation=1):
    return (kernel_size * dilation - dilation) // 2


def _round_up(x, m):
    return ((x + m - 1) // m) * m


# ---------------------------------------------------------------------------
# Pallas kernel: fused (im2col @ W) + bias + LeakyReLU
# ---------------------------------------------------------------------------
def _mm_bias_act_kernel(x_ref, w_ref, b_ref, o_ref, *, slope):
    acc = jnp.dot(x_ref[...], w_ref[...], preferred_element_type=jnp.float32)
    acc = acc + b_ref[...]
    if slope is not None:                      # last conv has no activation
        acc = jnp.where(acc >= 0.0, acc, slope * acc)
    o_ref[...] = acc.astype(o_ref.dtype)


def conv_as_matmul(x_col, w_mat, bias, slope):
    """x_col: (M, K) im2col rows, w_mat: (K, Cout), bias: (Cout,) -> (M, Cout) f32."""
    M, K = x_col.shape
    Cout = w_mat.shape[1]

    # Lane-starved layers (Cout not a multiple of 128, or tiny K) are negligible
    # compute; keep them in plain XLA instead of a 1-/32-lane Pallas matmul.
    if Cout % 128 != 0 or K < 128:
        out = jnp.dot(x_col, w_mat) + bias[None, :]
        if slope is not None:
            out = jnp.where(out >= 0.0, out, slope * out)
        return out.astype(jnp.float32)

    # bf16 operands (MXU native path, half the HBM/VMEM traffic), f32 accumulate.
    x_col = x_col.astype(jnp.bfloat16)
    w_mat = w_mat.astype(jnp.bfloat16)
    bias2 = bias.reshape(1, Cout).astype(jnp.float32)

    # Tile sizes: large M tiles (full-height MXU pushes, few grid steps), output
    # channels on a 128/256-lane axis.  M padded to a multiple of 16 (bf16
    # sublane packing), then to a multiple of tm.
    tn = 256 if Cout % 256 == 0 else 128
    tm = min(256, _round_up(M, 16))
    Mp = _round_up(M, tm)
    if Mp != M:
        x_col = jnp.pad(x_col, ((0, Mp - M), (0, 0)))

    # Grid: Cout blocks OUTER, M blocks INNER -> the (K, tn) weight block keeps
    # the same block index across the whole inner M sweep, so Pallas keeps it
    # resident in VMEM instead of re-reading the (multi-MB) weights per M tile.
    grid = (Cout // tn, Mp // tm)

    cost = pl.CostEstimate(
        flops=2 * Mp * K * Cout,
        transcendentals=0,
        bytes_accessed=Mp * K * 2 + K * Cout * 2 + Mp * Cout * 4,
    )

    out = pl.pallas_call(
        functools.partial(_mm_bias_act_kernel, slope=slope),
        out_shape=jax.ShapeDtypeStruct((Mp, Cout), jnp.float32),
        grid=grid,
        in_specs=[
            pl.BlockSpec((tm, K), lambda j, i: (i, 0)),   # activations: stream over M
            pl.BlockSpec((K, tn), lambda j, i: (0, j)),   # weights: resident over M
            pl.BlockSpec((1, tn), lambda j, i: (0, j)),   # bias
        ],
        out_specs=pl.BlockSpec((tm, tn), lambda j, i: (i, j)),
        compiler_params=pltpu.CompilerParams(
            dimension_semantics=("parallel", "parallel"),
            vmem_limit_bytes=32 * 1024 * 1024,   # leaves headroom on v7x (64 MiB phys)
        ),
        cost_estimate=cost,
    )(x_col, w_mat, bias2)

    if Mp != M:
        out = out[:M]
    return out


# ---------------------------------------------------------------------------
# Module definition (deterministic synthetic parameters)
# ---------------------------------------------------------------------------
_SLOPE = 0.1
_PERIODS = (2, 3, 5, 7, 11)

# (cin, cout, kernel_h, stride_h, pad_h, has_leaky_relu)
_LAYER_CFG = [
    (1,    32,   5, 3, get_padding(5, 1), True),
    (32,   128,  5, 3, get_padding(5, 1), True),
    (128,  512,  5, 3, get_padding(5, 1), True),
    (512,  1024, 5, 3, get_padding(5, 1), True),
    (1024, 1024, 5, 1, 2,                 True),
    (1024, 1,    3, 1, 1,                 False),
]


def init_subblock_params(key):
    params = []
    for (cin, cout, k, _, _, _) in _LAYER_CFG:
        key, wk, bk = jax.random.split(key, 3)
        bound = 1.0 / math.sqrt(cin * k)
        w = jax.random.uniform(wk, (cout, cin, k, 1), jnp.float32, -bound, bound)
        b = jax.random.uniform(bk, (cout,), jnp.float32, -bound, bound)
        params.append((w, b))
    return params


def init_mpd_block_params(key):
    return [init_subblock_params(k) for k in jax.random.split(key, len(_PERIODS))]


@functools.partial(jax.jit, static_argnums=(2,))
def mpd_subblock_forward(x, params, p):
    """x: (B, C, T) float32 (PyTorch convention). Returns (flat, feature_map)."""
    B, Cin0, T = x.shape
    pad = (p - T % p) % p
    x = jnp.pad(x, ((0, 0), (0, 0), (0, pad)), mode="reflect")
    H = (T + p - 1) // p
    x = x.reshape(B, Cin0, H, p)                            # NCHW

    # internal column layout: (B*W, H, C) — each of the B*p columns is an
    # independent 1-D conv along H.
    xk = jnp.transpose(x, (0, 3, 2, 1)).reshape(B * p, H, Cin0)

    feature_map = []
    for (w, b), (cin, cout, k, stride, pad_h, act) in zip(params, _LAYER_CFG):
        N, Hc, Cc = xk.shape
        x_pad = jnp.pad(xk, ((0, 0), (pad_h, pad_h), (0, 0)))   # zero pad (conv)
        HO = (Hc + 2 * pad_h - k) // stride + 1

        # im2col (XLA glue): rows are (kh-major, ci-minor) patches.
        # TODO(synk): fuse the tap loop into the Pallas kernel (per-tap
        # accumulate) to avoid materializing the k/stride-times duplicated
        # activations in HBM for the early layers.
        idx = jnp.arange(HO)[:, None] * stride + jnp.arange(k)[None, :]   # (HO, k)
        x_col = x_pad[:, idx, :].reshape(N * HO, k * cin)

        # weight (Cout, Cin, k, 1) -> (k*Cin, Cout) matching the im2col ordering
        w_mat = jnp.transpose(w[:, :, :, 0], (2, 1, 0)).reshape(k * cin, cout)

        out = conv_as_matmul(x_col, w_mat, b, _SLOPE if act else None)
        xk = out.reshape(N, HO, cout)

        # feature map in PyTorch NCHW: (B, Cout, HO, p)
        fm = jnp.transpose(xk.reshape(B, p, HO, cout), (0, 3, 2, 1))
        feature_map.append(fm)

    final = feature_map[-1]                                 # (B, 1, HO, p)
    flat = final.reshape(B, -1)                             # torch.flatten(x, 1, -1)
    return flat, feature_map


def mpd_block_forward(real, fake, block_params):
    """MPDBlock.forward: run all 5 period sub-blocks on real and fake."""
    real_res, real_fm, fake_res, fake_fm = [], [], [], []
    for p, params in zip(_PERIODS, block_params):
        rr, rfm = mpd_subblock_forward(real, params, p)
        fr, ffm = mpd_subblock_forward(fake, params, p)
        real_res.append(rr)
        real_fm.append(rfm)
        fake_res.append(fr)
        fake_fm.append(ffm)
    return real_res, real_fm, fake_res, fake_fm


# ---------------------------------------------------------------------------
if __name__ == "__main__":
    key = jax.random.PRNGKey(0)
    pkey, rkey, fkey = jax.random.split(key, 3)

    B, C, T = 2, 1, 62
    block_params = init_mpd_block_params(pkey)
    real = jax.random.normal(rkey, (B, C, T), dtype=jnp.float32)
    fake = jax.random.normal(fkey, (B, C, T), dtype=jnp.float32)

    # --- numerical sanity check of the fused matmul+bias+LeakyReLU kernel ---
    km, kw2, kb2 = jax.random.split(jax.random.PRNGKey(1), 3)
    Mt, Kt, Ct = 48, 640, 512
    xt = jax.random.normal(km, (Mt, Kt), jnp.float32)
    wt = jax.random.normal(kw2, (Kt, Ct), jnp.float32) / math.sqrt(Kt)
    bt = jax.random.normal(kb2, (Ct,), jnp.float32)
    got = conv_as_matmul(xt, wt, bt, _SLOPE)
    ref = xt @ wt + bt[None, :]
    ref = jnp.where(ref >= 0.0, ref, _SLOPE * ref)
    err = float(jnp.max(jnp.abs(got - ref)))
    scale = float(jnp.max(jnp.abs(ref)))
    assert err <= 2e-2 * scale + 1e-4, (err, scale)   # bf16-input tolerance

    # --- full MPDBlock forward (real + fake, periods 2/3/5/7/11) ---
    real_res, real_fm, fake_res, fake_fm = mpd_block_forward(real, fake, block_params)
    jax.block_until_ready((real_res, real_fm, fake_res, fake_fm))

    for p, flat_r, fms_r, flat_f, fms_f in zip(_PERIODS, real_res, real_fm,
                                               fake_res, fake_fm):
        Tp = T + (p - T % p) % p
        h = Tp // p
        expected = []
        for (_, cout, k, s, pad_h, _) in _LAYER_CFG:
            h = (h + 2 * pad_h - k) // s + 1
            expected.append((B, cout, h, p))
        assert [tuple(f.shape) for f in fms_r] == expected, (p, [f.shape for f in fms_r])
        assert [tuple(f.shape) for f in fms_f] == expected
        assert flat_r.shape == (B, expected[-1][2] * p)
        assert flat_f.shape == (B, expected[-1][2] * p)
        assert bool(jnp.isfinite(flat_r).all()) and bool(jnp.isfinite(flat_f).all())

    print("KERNEL_OK")
</pallas_src>

<mosaic_0001>
module attributes {stable_mosaic.version = 11 : i64} {
  func.func @_mm_bias_act_kernel(%arg0: i32, %arg1: i32, %arg2: memref<48x640xbf16, #tpu.memory_space<vmem>>, %arg3: memref<640x256xbf16, #tpu.memory_space<vmem>>, %arg4: memref<1x256xf32, #tpu.memory_space<vmem>>, %arg5: memref<48x256xf32, #tpu.memory_space<vmem>>) attributes {dimension_semantics = [#tpu.dimension_semantics<parallel>, #tpu.dimension_semantics<parallel>], iteration_bounds = array<i64: 2, 1>, scalar_prefetch = 0 : i64, scratch_operands = 0 : i64, tpu.core_type = #tpu.core_type<tc>, window_params = [{transform_indices = @transform_0, window_bounds = array<i64: 48, 640>}, {transform_indices = @transform_1, window_bounds = array<i64: 640, 256>}, {transform_indices = @transform_2, window_bounds = array<i64: 1, 256>}, {transform_indices = @transform_3, window_bounds = array<i64: 48, 256>}]} {
    %c0 = arith.constant 0 : index
    %c0_0 = arith.constant 0 : index
    %0 = vector.load %arg2[%c0, %c0_0] : memref<48x640xbf16, #tpu.memory_space<vmem>>, vector<48x640xbf16>
    %c0_1 = arith.constant 0 : index
    %c0_2 = arith.constant 0 : index
    %1 = vector.load %arg3[%c0_1, %c0_2] : memref<640x256xbf16, #tpu.memory_space<vmem>>, vector<640x256xbf16>
    %cst = arith.constant dense<0.000000e+00> : vector<48x256xf32>
    %2 = tpu.matmul %0, %1, %cst {dimension_numbers = #tpu.dot_dimension_numbers<[1], [0], [0], [1], [0, 0, 1, 1], [], []>} : vector<48x640xbf16>, vector<640x256xbf16>, vector<48x256xf32> -> vector<48x256xf32>
    %c0_3 = arith.constant 0 : index
    %c0_4 = arith.constant 0 : index
    %3 = vector.load %arg4[%c0_3, %c0_4] : memref<1x256xf32, #tpu.memory_space<vmem>>, vector<1x256xf32>
    %4 = vector.broadcast %3 : vector<1x256xf32> to vector<48x256xf32>
    %5 = arith.addf %2, %4 : vector<48x256xf32>
    %cst_5 = arith.constant 0.000000e+00 : f32
    %6 = vector.broadcast %cst_5 : f32 to vector<48x256xf32>
    %7 = arith.cmpf oge, %5, %6 : vector<48x256xf32>
    %cst_6 = arith.constant 1.000000e-01 : f32
    %8 = vector.broadcast %cst_6 : f32 to vector<48x256xf32>
    %9 = arith.mulf %8, %5 : vector<48x256xf32>
    %10 = arith.select %7, %5, %9 : vector<48x256xi1>, vector<48x256xf32>
    %c0_7 = arith.constant 0 : index
    %c0_8 = arith.constant 0 : index
    %11 = vector.load %arg5[%c0_7, %c0_8] : memref<48x256xf32, #tpu.memory_space<vmem>>, vector<48x256xf32>
    tpu.vector_store %arg5[%c0_7, %c0_8], %10 {strides = array<i32>} : memref<48x256xf32, #tpu.memory_space<vmem>>, vector<48x256xf32>,
    return
  }
  func.func @transform_0(%arg0: i32, %arg1: i32) -> (i32, i32) {
    %c0_i32 = arith.constant 0 : i32
    %c0_i32_0 = arith.constant 0 : i32
    return %arg1, %c0_i32 : i32, i32
  }
  func.func @transform_1(%arg0: i32, %arg1: i32) -> (i32, i32) {
    %c0_i32 = arith.constant 0 : i32
    %c0_i32_0 = arith.constant 0 : i32
    return %c0_i32, %arg0 : i32, i32
  }
  func.func @transform_2(%arg0: i32, %arg1: i32) -> (i32, i32) {
    %c0_i32 = arith.constant 0 : i32
    %c0_i32_0 = arith.constant 0 : i32
    return %c0_i32, %arg0 : i32, i32
  }
  func.func @transform_3(%arg0: i32, %arg1: i32) -> (i32, i32) {
    %c0_i32 = arith.constant 0 : i32
    return %arg1, %arg0 : i32, i32
  }
}

</mosaic_0001>

<bundles_post_ra>
// kernel: tpu_custom_call.1
= control target key start
LH: loop header
LB: loop body
LE: loop exit
PB: predicated region body
PF: predicated region fallthrough
CT: control target
= control target key end

     0   :  { %8 = vsyncpa [#allocation3], 0  ;;  %s2095_s0 = inlined_call_operand.hbm [shape: bf16[48,640], index: 0, kind: input, shape index: {}]   ;;  %s2096_s1 = inlined_call_operand.hbm [shape: bf16[640,512], index: 1, kind: input, shape index: {}]   ;;  %s2097_s2 = inlined_call_operand.vmem [shape: f32[1,512], index: 2, kind: input, shape index: {}]   ;;  %s2098_s3 = inlined_call_operand.hbm [shape: f32[48,512], index: 3, kind: output, shape index: {}]  }
   0x1   :  { %9 = vsyncpa [#allocation6], 0 }
   0x2   :  { %11 = vsyncpa [#allocation6 + $0x1], 0 }
   0x3   :  { %12 = vsyncpa [#allocation4], 0 }
   0x4   :  { %14 = vsyncpa [#allocation4 + $0x1], 0  ;;  %s1767_s12 = smov 0   ;;  %s1769_s13 = smov 0  }
   0x5   :  { %s1771_s14 = smov 0   ;;  %s1773_s15 = smov 0  }
   0x6   :  { %s1775_s16 = smov 0   ;;  %s1777_s17 = smov 0  }
   0x7 LB: > { %s1200_s18 = sadd.s32 4294967295, %s1733_s17   ;;  %s1201_s19 = sadd.s32 4294967294, %s1733_s17   ;;  %s1733_s17 = sphi %s1777_s17, %s20_s17   ;;  %s1729_s16 = sphi %s1775_s16, %s2124_s16   ;;  %s1725_s15 = sphi %s1773_s15, %s2123_s15   ;;  %s1721_s14 = sphi %s1771_s14, %s2122_s14   ;;  %s1717_s13 = sphi %s1769_s13, %s2121_s13   ;;  %s1713_s12 = sphi %s1767_s12, %s2120_s12  }
   0x8   : > { %p72_p0 = scmp.ne.s32.totalorder %s1721_s14, %s1717_s13  ;;  %p73_p1 = scmp.eq.s32.totalorder %s1733_s17, 0 }
   0x9   : > { %p78_p2 = scmp.ne.s32.totalorder %s1717_s13, %s1713_s12  ;;  %p1804_p3 = scmp.eq.s32.totalorder %s1200_s18, 0 }
   0xa   : > { %p1808_p4 = por %p73_p1, %p72_p0  ;;  %p130_p5 = scmp.eq.s32.totalorder %s1200_s18, 1 }
   0xb   : > { %s2105_s20 = scalar_select %p1804_p3, 1, 0 }
   0xc   : > { %p1814_p6 = por %p1804_p3, %p78_p2  ;;  %p136_p7 = scmp.eq.s32.totalorder %s1201_s19, 1 }
   0xd   : > { %p1818_p8 = por %p130_p5, %p72_p0  ;;  %p1202_p9 = scmp.ge.s32.totalorder %s1733_s17, 1 }
   0xe   : > { %s2107_s22 = scalar_select %p1814_p6, 1, 0 }
   0xf   : > { %s2108_s23 = scalar_select %p1818_p8, 1, 0 }
  0x10   : > { %p1823_p10 = por %p136_p7, %p78_p2  ;;  %p143_p11 = scmp.lt.s32.totalorder %s1733_s17, 3 }
  0x11   : > { %s1735_s26 = smov [#allocation2]   ;;  %p1387_p1 = scmp.lt.s32.totalorder %s1733_s17, 2 }
  0x12   : > { %s2109_s24 = scalar_select %p1823_p10, 1, 0 }
  0x13   : > { %p1828_p12 = pnand %p1202_p9, %p143_p11  ;;  %s159_s27 = sshll.u32 %s1735_s26, 4  ;;  %s1832_s27 = int_to_ptr.vmem [resolvable:$true] %s159_s27 }
  0x14   : > { %p1846_p2 = pnand %p1387_p1, %p1808_p4  ;;  %s32_s30 = sadd.s32 1, %s1729_s16 }
  0x15   : > { %s2110_s25 = scalar_select %p1828_p12, 1, 0 }
  0x16   : > { %p1374_p13 = pneg %p1828_p12  ;;  %s1589_s6 = scalar_lea.hbm %s2095_s0, 1920 }
  0x17   : > { %s2112_s29 = scalar_select %p1846_p2, 1, 0 }
  0x18   : > { %p1840_p5 = pnand %p1374_p13, %p1804_p3  ;;  %p1590_p7 = scmp.ne.s32.totalorder %s2095_s0, %s1589_s6 }
  0x19   : > { %p1596_p4 = scmp.lt.u32.totalorder %s1589_s6, %s2095_s0 }
  0x1a   : > { %p1591_p9 = pneg %p1840_p5 }
  0x1c   : > { %p1592_p11 = pnand %p1591_p9, %p1590_p7 }
  0x1e   : > { %p1593_p13 = pneg %p1592_p11 }
  0x20   : > { %p1598_p1 = pnand %p1596_p4, %p1593_p13 }
  0x22   : > { %1601 = shalt.err (!%p1598_p1)
}
  0x23   : > { %s1602_s11 = scalar_lea.vmem %s1832_s27, 1920  ;;  %p1610_p6 = scmp.lt.s32.totalorder %s1832_s27, %s1832_s27 }
  0x24   : > { %p1603_p0 = scmp.ne.s32.totalorder %s1832_s27, %s1602_s11  ;;  %p1611_p3 = scmp.lt.s32.totalorder %s1602_s11, %s1602_s11 }
  0x26   : > { %p1605_p10 = pnand %p1603_p0, %p1591_p9  ;;  %p1612_p12 = por %p1611_p3, %p1610_p6 }
  0x28   : > { %p1606_p8 = pneg %p1605_p10 }
  0x2a   : > { %p1613_p2 = pnand %p1612_p12, %p1606_p8 }
  0x2c   : > { %1616 = shalt.err (!%p1613_p2)
}
  0x2d   : > { %s1736_s18 = smov 320   ;;  %s1737_s19 = smov 20  }
  0x2e   : > { %1377 = dma.hbm_to_vmem [thread:$0]  (!%p1840_p5), %s2095_s0, 1920, %s1832_s27, [#allocation3], %s1736_s18, %s1736_s18, %s1737_s19  }
  0x2f   : > { %p34_p10 = scmp.ge.s32.totalorder %s32_s30, 2  ;;  %s65_s4 = sadd.s32 1, %s1721_s14 }
  0x30   : > { %s173_s5 = sand.u32 1, %s1721_s14   ;;  %s1309_s8 = sshll.u32 %s1729_s16, 7 }
  0x31   : > { %s2126_s30 = smov (%p34_p10, %s32_s30), 0  ;;  %s1363_s6 = smul.u32 640, %s173_s5 }
  0x32   : > { %s62_s7 = ssub.s32 %s1729_s16, %s2126_s30  ;;  %s1882_s28 = scalar_lea.hbm %s2096_s1, %s1309_s8 }
  0x33   : > { %p63_p3 = scmp.eq.s32.totalorder %s62_s7, 0  ;;  %s177_s27 = scalar_lea.vmem [#allocation5], %s1363_s6 }
  0x34   : > { %s184_s11 = sshll.u32 %s177_s27, 4  ;;  %s1889_s19 = scalar_lea.sflag [#allocation6], %s173_s5  ;;  %s1887_s11 = int_to_ptr.vmem [resolvable:$true] %s184_s11 }
  0x35   : > { %s1885_s18 = scalar_select %p63_p3, %s1721_s14, %s65_s4  }
  0x36   : > { %s1617_s21 = scalar_lea.hbm %s1882_s28, 10240  ;;  %p2113_p8 = scmp.ne.s32.totalorder %s2112_s29, 0 }
  0x37   : > { %p1618_p6 = scmp.ne.s32.totalorder %s1882_s28, %s1617_s21  ;;  %s1622_s8 = scalar_lea.hbm %s2096_s1, 20480 }
  0x38   : > { %p1619_p12 = pneg %p2113_p8  ;;  %p1623_p2 = scmp.lt.u32.totalorder %s1882_s28, %s2096_s1 }
  0x39   : > { %p1624_p7 = scmp.lt.u32.totalorder %s1622_s8, %s1617_s21  ;;  %p1626_p11 = scmp.lt.u32.totalorder %s1617_s21, %s1882_s28 }
  0x3a   : > { %p1620_p0 = pnand %p1619_p12, %p1618_p6 }
  0x3b   : > { %p1625_p9 = por %p1624_p7, %p1623_p2 }
  0x3c   : > { %p1621_p5 = pneg %p1620_p0 }
  0x3d   : > { %p1627_p13 = por %p1626_p11, %p1625_p9 }
  0x3f   : > { %p1628_p4 = pnand %p1627_p13, %p1621_p5 }
  0x41   : > { %1631 = shalt.err (!%p1628_p4)
}
  0x42   : > { %s1632_s4 = scalar_lea.vmem %s1887_s11, 10240  ;;  %s1738_s5 = smov [#allocation5]  }
  0x43   : > { %p1633_p1 = scmp.ne.s32.totalorder %s1887_s11, %s1632_s4  ;;  %s1637_s10 = sshll.u32 %s1738_s5, 4  ;;  %s1638_s10 = int_to_ptr.vmem [resolvable:$false] %s1637_s10 }
  0x44   : > { %s1639_s27 = scalar_lea.vmem %s1638_s10, 20480  ;;  %p1640_p6 = scmp.lt.s32.totalorder %s1887_s11, %s1638_s10 }
  0x45   : > { %p1635_p10 = pnand %p1633_p1, %p1619_p12  ;;  %p1641_p0 = scmp.lt.s32.totalorder %s1639_s27, %s1632_s4 }
  0x47   : > { %p1636_p3 = pneg %p1635_p10  ;;  %p1642_p2 = por %p1641_p0, %p1640_p6 }
  0x49   : > { %p1643_p7 = pnand %p1642_p2, %p1636_p3 }
  0x4b   : > { %1646 = shalt.err (!%p1643_p7)
}
  0x4c   : > { %s1739_s21 = smov 256   ;;  %s1740_s26 = smov 128  }
  0x4d   : > { %s1741_s7 = smov 8   ;;  %p2114_p12 = scmp.ne.s32.totalorder %s2110_s25, 0 }
  0x4e   : > { %1381 = dma.hbm_to_vmem [thread:$0]  (!%p2113_p8), %s1882_s28, 10240, %s1887_s11, %s1889_s19, %s1739_s21, %s1740_s26, %s1741_s7  }
  0x4f   : > { %204 = sbr.rel (%p2114_p12) target bundleno = 434 (0x1b2), region = 32  ;;  %p2115_p5 = scmp.ne.s32.totalorder (!%p2114_p12), %s2105_s20, 0 }
  0x56   : > { %1700 = dma.done.wait (%p2115_p5), [#allocation3], 1920  }
  0x57   : > { %1702 = vsyncadd (%p2115_p5), [#allocation3], 4294965376  ;;  %s1924_s8 = sand.u32 1, %s1717_s13   ;;  %p2116_p8 = scmp.ne.s32.totalorder %s2107_s22, 0 }
  0x58   : > { %s1364_s6 = smul.u32 640, %s1924_s8  ;;  %s211_s9 = scalar_lea.sflag [#allocation6], %s1924_s8 }
  0x5a   : > { %s1928_s4 = scalar_lea.vmem [#allocation5], %s1364_s6 }
  0x5b   : > { %1704 = dma.done.wait (%p2116_p8), %s211_s9, 10240  }
  0x5c   : > { %1706 = vsyncadd (%p2116_p8), %s211_s9, 4294957056  ;;  %v1448_v0 = vld [vmem:[%s1928_s4 + $0x4] ss:$8 sps:$4 sm:$0xff]   ;;  %v1452_v2 = vld [vmem:[%s1928_s4] ss:$8 sps:$4 sm:$0xff]   ;;  %s1209_s20 = sshll.u32 %s1725_s15, 1 }
  0x5d   : > { %v1450_v1 = vld [vmem:[%s1928_s4 + $0x104] ss:$8 sps:$4 sm:$0xff]   ;;  %839 = vmatprep.subr.bf16.mxu1 %v1448_v0  ;;  %v1453_v3 = vld [vmem:[%s1928_s4 + $0x100] ss:$8 sps:$4 sm:$0xff]   ;;  %v1454_v4 = vld [vmem:[%s1928_s4 + $0x14] ss:$8 sps:$4 sm:$0xff]  }
  0x5e   : > { %902 = vmatprep.subr.bf16.mxu0 %v1450_v1  ;;  %840 = vmatpush1.bf16.msra.mxu1 %v1452_v2  ;;  %v1456_v5 = vld [vmem:[%s1928_s4 + $0x114] ss:$8 sps:$4 sm:$0xff]   ;;  %v1458_v6 = vld [vmem:[%s1928_s4 + $0x10] ss:$8 sps:$4 sm:$0xff]   ;;  %v1460_v8 = vld [vmem:[%s1928_s4 + $0x24] ss:$8 sps:$4 sm:$0xff]  }
  0x5f   : > { %903 = vmatpush1.bf16.msra.mxu0 %v1453_v3  ;;  %841 = vmatprep.subr.bf16.mxu1 %v1454_v4  ;;  %v1459_v7 = vld [vmem:[%s1928_s4 + $0x110] ss:$8 sps:$4 sm:$0xff]   ;;  %v1462_v9 = vld [vmem:[%s1928_s4 + $0x124] ss:$8 sps:$4 sm:$0xff]   ;;  %v1464_v10 = vld [vmem:[%s1928_s4 + $0x20] ss:$8 sps:$4 sm:$0xff]  }
  0x60   : > { %904 = vmatprep.subr.bf16.mxu0 %v1456_v5  ;;  %v1465_v11 = vld [vmem:[%s1928_s4 + $0x120] ss:$8 sps:$4 sm:$0xff]   ;;  %v1466_v12 = vld [vmem:[%s1928_s4 + $0x34] ss:$8 sps:$4 sm:$0xff]   ;;  %v1470_v14 = vld [vmem:[%s1928_s4 + $0x30] ss:$8 sps:$4 sm:$0xff]  }
  0x61   : > { %v1468_v13 = vld [vmem:[%s1928_s4 + $0x134] ss:$8 sps:$4 sm:$0xff]   ;;  %v1471_v15 = vld [vmem:[%s1928_s4 + $0x130] ss:$8 sps:$4 sm:$0xff]   ;;  %v1472_v16 = vld [vmem:[%s1928_s4 + $0x44] ss:$8 sps:$4 sm:$0xff]  }
  0x62   : > { %842 = vmatpush1.bf16.msra.mxu1 %v1458_v6  ;;  %v1474_v17 = vld [vmem:[%s1928_s4 + $0x144] ss:$8 sps:$4 sm:$0xff]   ;;  %v1476_v18 = vld [vmem:[%s1928_s4 + $0x40] ss:$8 sps:$4 sm:$0xff]   ;;  %v1478_v20 = vld [vmem:[%s1928_s4 + $0x54] ss:$8 sps:$4 sm:$0xff]  }
  0x63   : > { %905 = vmatpush1.bf16.msra.mxu0 %v1459_v7  ;;  %843 = vmatprep.subr.bf16.mxu1 %v1460_v8  ;;  %v1477_v19 = vld [vmem:[%s1928_s4 + $0x140] ss:$8 sps:$4 sm:$0xff]   ;;  %v1480_v21 = vld [vmem:[%s1928_s4 + $0x154] ss:$8 sps:$4 sm:$0xff]   ;;  %v1482_v22 = vld [vmem:[%s1928_s4 + $0x50] ss:$8 sps:$4 sm:$0xff]  }
  0x64   : > { %906 = vmatprep.subr.bf16.mxu0 %v1462_v9  ;;  %v1483_v23 = vld [vmem:[%s1928_s4 + $0x150] ss:$8 sps:$4 sm:$0xff]   ;;  %v1484_v24 = vld [vmem:[%s1928_s4 + $0x64] ss:$8 sps:$4 sm:$0xff]   ;;  %v1488_v26 = vld [vmem:[%s1928_s4 + $0x60] ss:$8 sps:$4 sm:$0xff]  }
  0x65   : > { %v1486_v25 = vld [vmem:[%s1928_s4 + $0x164] ss:$8 sps:$4 sm:$0xff]   ;;  %v1489_v27 = vld [vmem:[%s1928_s4 + $0x160] ss:$8 sps:$4 sm:$0xff]   ;;  %v1490_v28 = vld [vmem:[%s1928_s4 + $0x74] ss:$8 sps:$4 sm:$0xff]  }
  0x66   : > { %844 = vmatpush1.bf16.msra.mxu1 %v1464_v10  ;;  %v1492_v29 = vld [vmem:[%s1928_s4 + $0x174] ss:$8 sps:$4 sm:$0xff]   ;;  %v1494_v30 = vld [vmem:[%s1928_s4 + $0x70] ss:$8 sps:$4 sm:$0xff]   ;;  %v1496_v32 = vld [vmem:[%s1928_s4 + $0x84] ss:$8 sps:$4 sm:$0xff]  }
  0x67   : > { %907 = vmatpush1.bf16.msra.mxu0 %v1465_v11  ;;  %845 = vmatprep.subr.bf16.mxu1 %v1466_v12  ;;  %v1495_v31 = vld [vmem:[%s1928_s4 + $0x170] ss:$8 sps:$4 sm:$0xff]   ;;  %v1498_v33 = vld [vmem:[%s1928_s4 + $0x184] ss:$8 sps:$4 sm:$0xff]   ;;  %v1500_v34 = vld [vmem:[%s1928_s4 + $0x80] ss:$8 sps:$4 sm:$0xff]  }
  0x68   : > { %908 = vmatprep.subr.bf16.mxu0 %v1468_v13  ;;  %v1501_v35 = vld [vmem:[%s1928_s4 + $0x180] ss:$8 sps:$4 sm:$0xff]   ;;  %v1502_v36 = vld [vmem:[%s1928_s4 + $0x94] ss:$8 sps:$4 sm:$0xff]   ;;  %v1506_v38 = vld [vmem:[%s1928_s4 + $0x90] ss:$8 sps:$4 sm:$0xff]  }
  0x69   : > { %v1504_v37 = vld [vmem:[%s1928_s4 + $0x194] ss:$8 sps:$4 sm:$0xff]   ;;  %v1507_v39 = vld [vmem:[%s1928_s4 + $0x190] ss:$8 sps:$4 sm:$0xff]   ;;  %v1508_v40 = vld [vmem:[%s1928_s4 + $0xa4] ss:$8 sps:$4 sm:$0xff]  }
  0x6a   : > { %846 = vmatpush1.bf16.msra.mxu1 %v1470_v14  ;;  %v1510_v41 = vld [vmem:[%s1928_s4 + $0x1a4] ss:$8 sps:$4 sm:$0xff]   ;;  %v1512_v42 = vld [vmem:[%s1928_s4 + $0xa0] ss:$8 sps:$4 sm:$0xff]   ;;  %v1514_v44 = vld [vmem:[%s1928_s4 + $0xb4] ss:$8 sps:$4 sm:$0xff]  }
  0x6b   : > { %909 = vmatpush1.bf16.msra.mxu0 %v1471_v15  ;;  %847 = vmatprep.subr.bf16.mxu1 %v1472_v16  ;;  %v1513_v43 = vld [vmem:[%s1928_s4 + $0x1a0] ss:$8 sps:$4 sm:$0xff]   ;;  %v1516_v45 = vld [vmem:[%s1928_s4 + $0x1b4] ss:$8 sps:$4 sm:$0xff]   ;;  %v1518_v46 = vld [vmem:[%s1928_s4 + $0xb0] ss:$8 sps:$4 sm:$0xff]  }
  0x6c   : > { %910 = vmatprep.subr.bf16.mxu0 %v1474_v17  ;;  %v1519_v47 = vld [vmem:[%s1928_s4 + $0x1b0] ss:$8 sps:$4 sm:$0xff]   ;;  %v1520_v48 = vld [vmem:[%s1928_s4 + $0xc4] ss:$8 sps:$4 sm:$0xff]   ;;  %v1549_v51 = vld [vmem:[#allocation2 + $0xc] ss:$20 sps:$4 sm:$0xff]  }
  0x6d   : > { %v1546_v49 = vld [vmem:[#allocation2 + $0x4] ss:$20 sps:$4 sm:$0xff]   ;;  %934 = vmatprep.mubr.bf16.mxu0 %v1549_v51  ;;  %v1526_v54 = vld [vmem:[%s1928_s4 + $0xd4] ss:$8 sps:$4 sm:$0xff]   ;;  %v1530_v56 = vld [vmem:[%s1928_s4 + $0xd0] ss:$8 sps:$4 sm:$0xff]  }
  0x6e   : > { %848 = vmatpush1.bf16.msra.mxu1 %v1476_v18  ;;  %v1522_v50 = vld [vmem:[%s1928_s4 + $0x1c4] ss:$8 sps:$4 sm:$0xff]   ;;  %871 = vmatprep.mubr.bf16.mxu1 %v1546_v49  ;;  %v1524_v52 = vld [vmem:[%s1928_s4 + $0xc0] ss:$8 sps:$4 sm:$0xff]   ;;  %v1528_v55 = vld [vmem:[%s1928_s4 + $0x1d4] ss:$8 sps:$4 sm:$0xff]  }
  0x6f   : > { %911 = vmatpush1.bf16.msra.mxu0 %v1477_v19  ;;  %849 = vmatprep.subr.bf16.mxu1 %v1478_v20  ;;  %v1525_v53 = vld [vmem:[%s1928_s4 + $0x1c0] ss:$8 sps:$4 sm:$0xff]   ;;  %v1531_v57 = vld [vmem:[%s1928_s4 + $0x1d0] ss:$8 sps:$4 sm:$0xff]   ;;  %v1532_v58 = vld [vmem:[%s1928_s4 + $0xe4] ss:$8 sps:$4 sm:$0xff]  }
  0x70   : > { %912 = vmatprep.subr.bf16.mxu0 %v1480_v21  ;;  %v1534_v59 = vld [vmem:[%s1928_s4 + $0x1e4] ss:$8 sps:$4 sm:$0xff]   ;;  %v1536_v60 = vld [vmem:[%s1928_s4 + $0xe0] ss:$8 sps:$4 sm:$0xff]   ;;  %v1538_v62 = vld [vmem:[%s1928_s4 + $0xf4] ss:$8 sps:$4 sm:$0xff]  }
  0x71   : > { %v1537_v61 = vld [vmem:[%s1928_s4 + $0x1e0] ss:$8 sps:$4 sm:$0xff]   ;;  %v1540_v63 = vld [vmem:[%s1928_s4 + $0x1f4] ss:$8 sps:$4 sm:$0xff]   ;;  %v1542_v0 = vld [vmem:[%s1928_s4 + $0xf0] ss:$8 sps:$4 sm:$0xff]  }
  0x72   : > { %850 = vmatpush1.bf16.msra.mxu1 %v1482_v22  ;;  %v1543_v1 = vld [vmem:[%s1928_s4 + $0x1f0] ss:$8 sps:$4 sm:$0xff]   ;;  %v1552_v2 = vld [vmem:[%s1928_s4 + $0x204] ss:$8 sps:$4 sm:$0xff]   ;;  %v1544_v3 = vld [vmem:[#allocation2] ss:$20 sps:$4 sm:$0xff]  }
  0x73   : > { %913 = vmatpush1.bf16.msra.mxu0 %v1483_v23  ;;  %851 = vmatprep.subr.bf16.mxu1 %v1484_v24  ;;  %v1547_v4 = vld [vmem:[#allocation2 + $0x8] ss:$20 sps:$4 sm:$0xff]   ;;  %v1550_v5 = vld [vmem:[%s1928_s4 + $0x200] ss:$8 sps:$4 sm:$0xff]   ;;  %v1555_v6 = vld [vmem:[%s1928_s4 + $0x214] ss:$8 sps:$4 sm:$0xff]  }
  0x74   : > { %914 = vmatprep.subr.bf16.mxu0 %v1486_v25  ;;  %v1559_v7 = vld [vmem:[#allocation2 + $0x2c] ss:$20 sps:$4 sm:$0xff]   ;;  %v1565_v8 = vld [vmem:[#allocation2 + $0x34] ss:$20 sps:$4 sm:$0xff]   ;;  %v1558_v10 = vld [vmem:[%s1928_s4 + $0x224] ss:$8 sps:$4 sm:$0xff]  }
  0x75   : > { %v1553_v9 = vld [vmem:[%s1928_s4 + $0x210] ss:$8 sps:$4 sm:$0xff]   ;;  %v1556_v13 = vld [vmem:[%s1928_s4 + $0x220] ss:$8 sps:$4 sm:$0xff]   ;;  %v1563_v14 = vld [vmem:[%s1928_s4 + $0x234] ss:$8 sps:$4 sm:$0xff]  }
  0x76   : > { %852 = vmatpush1.bf16.msra.mxu1 %v1488_v26  ;;  %v1564_v11 = vld [vmem:[#allocation2 + $0x28] ss:$20 sps:$4 sm:$0xff]   ;;  %v1567_v12 = vld [vmem:[#allocation2 + $0x30] ss:$20 sps:$4 sm:$0xff]   ;;  %v1579_v20 = vld [vmem:[#allocation2 + $0x58] ss:$20 sps:$4 sm:$0xff]  }
  0x77   : > { %915 = vmatpush1.bf16.msra.mxu0 %v1489_v27  ;;  %853 = vmatprep.subr.bf16.mxu1 %v1490_v28  ;;  %v1571_v15 = vld [vmem:[#allocation2 + $0x54] ss:$20 sps:$4 sm:$0xff]   ;;  %v1577_v16 = vld [vmem:[#allocation2 + $0x5c] ss:$20 sps:$4 sm:$0xff]   ;;  %v1568_v21 = vld [vmem:[%s1928_s4 + $0x240] ss:$8 sps:$4 sm:$0xff]  }
  0x78   : > { %916 = vmatprep.subr.bf16.mxu0 %v1492_v29  ;;  %v1561_v17 = vld [vmem:[%s1928_s4 + $0x230] ss:$8 sps:$4 sm:$0xff]   ;;  %v1570_v18 = vld [vmem:[%s1928_s4 + $0x244] ss:$8 sps:$4 sm:$0xff]   ;;  %v1575_v22 = vld [vmem:[%s1928_s4 + $0x254] ss:$8 sps:$4 sm:$0xff]  }
  0x79   : > { %v1576_v19 = vld [vmem:[#allocation2 + $0x50] ss:$20 sps:$4 sm:$0xff]   ;;  %v1742_v25 = vmov 0   ;;  %v1580_v26 = vld [vmem:[%s1928_s4 + $0x260] ss:$8 sps:$4 sm:$0xff]   ;;  %p244_p9 = scmp.lt.s32.totalorder %s1209_s20, 3 }
  0x7a   : > { %854 = vmatpush1.bf16.msra.mxu1 %v1494_v30  ;;  %v1573_v23 = vld [vmem:[%s1928_s4 + $0x250] ss:$8 sps:$4 sm:$0xff]   ;;  %v1582_v24 = vld [vmem:[%s1928_s4 + $0x264] ss:$8 sps:$4 sm:$0xff]   ;;  %v1585_v27 = vld [vmem:[%s1928_s4 + $0x274] ss:$8 sps:$4 sm:$0xff]  }
  0x7b   : > { %917 = vmatpush1.bf16.msra.mxu0 %v1495_v31  ;;  %855 = vmatprep.subr.bf16.mxu1 %v1496_v32  ;;  %v1583_v28 = vld [vmem:[%s1928_s4 + $0x270] ss:$8 sps:$4 sm:$0xff]   ;;  %v1587_v30 = vld [vmem:[#allocation2 + $0x38] ss:$20 sps:$4 sm:$0xff]   ;;  %v1588_v31 = vld [vmem:[#allocation2 + $0x60] ss:$20 sps:$4 sm:$0xff]   ;;  %v351_v32 = vlaneseq }
  0x7c   : > { %918 = vmatprep.subr.bf16.mxu0 %v1498_v33  ;;  %v1586_v29 = vld [vmem:[#allocation2 + $0x10] ss:$20 sps:$4 sm:$0xff]   ;;  %s2128_s20 = smov (!%p244_p9, %s1209_s20), 3  ;;  %s1365_s28 = smul.u32 96, %s1924_s8 }
  0x7d   : > { %v352_v33 = vshrl.u32 %v351_v32, 7  ;;  %s246_s29 = scalar_lea.vmem %s2097_s2, %s2128_s20  ;;  %s1310_s19 = sshll.u32 %s1725_s15, 8 }
  0x7e   : > { %856 = vmatpush1.bf16.msra.mxu1 %v1500_v34  ;;  %s2023_s11 = scalar_lea.vmem [#allocation7], %s1365_s28  ;;  %s2040_s27 = scalar_lea.hbm %s2098_s3, %s1310_s19 }
  0x7f   : > { %919 = vmatpush1.bf16.msra.mxu0 %v1501_v35  ;;  %857 = vmatprep.subr.bf16.mxu1 %v1502_v36  ;;  %s1093_s5 = sshll.u32 %s2023_s11, 4  ;;  %s1077_s21 = scalar_lea.sflag [#allocation4], %s1924_s8  ;;  %s2043_s5 = int_to_ptr.vmem [resolvable:$true] %s1093_s5 }
  0x80   : > { %920 = vmatprep.subr.bf16.mxu0 %v1504_v37  ;;  %v353_v37 = vsub.s32 0, %v352_v33  ;;  %s1647_s26 = scalar_lea.vmem %s2043_s5, 1536  ;;  %p2117_p13 = scmp.ne.s32.totalorder %s2108_s23, 0 }
  0x81   : > { %p1648_p11 = scmp.ne.s32.totalorder %s2043_s5, %s1647_s26  ;;  %s1743_s7 = smov [#allocation7]  }
  0x82   : > { %858 = vmatpush1.bf16.msra.mxu1 %v1506_v38  ;;  %s1651_s6 = sshll.u32 %s1743_s7, 4  ;;  %s1652_s6 = int_to_ptr.vmem [resolvable:$false] %s1651_s6 }
  0x83   : > { %921 = vmatpush1.bf16.msra.mxu0 %v1507_v39  ;;  %859 = vmatprep.subr.bf16.mxu1 %v1508_v40  ;;  %v349_v39 = vld [vmem:[%s246_s29] sm:$0x3]  ;;  %v357_v40 = vsub.s32 1, %v352_v33  ;;  %p1649_p4 = pnand %p1648_p11, %p2117_p13  ;;  %s1653_s9 = scalar_lea.vmem %s1652_s6, 3072 }
  0x84   : > { %922 = vmatprep.subr.bf16.mxu0 %v1510_v41  ;;  %v354_v41 = vrot.slane %v349_v39, %v353_v37  ;;  %p1654_p10 = scmp.lt.s32.totalorder %s2043_s5, %s1652_s6  ;;  %p1655_p3 = scmp.lt.s32.totalorder %s1653_s9, %s1647_s26 }
  0x85   : > { %p1650_p1 = pneg %p1649_p4 }
  0x86   : > { %860 = vmatpush1.bf16.msra.mxu1 %v1512_v42  ;;  %v358_v42 = vrot.slane %v349_v39, %v357_v40  ;;  %p1656_p6 = por %p1655_p3, %p1654_p10 }
  0x87   : > { %923 = vmatpush1.bf16.msra.mxu0 %v1513_v43  ;;  %861 = vmatprep.subr.bf16.mxu1 %v1514_v44 }
  0x88   : > { %924 = vmatprep.subr.bf16.mxu0 %v1516_v45  ;;  %p1657_p0 = pnand %p1656_p6, %p1650_p1 }
  0x8a   : > { %862 = vmatpush1.bf16.msra.mxu1 %v1518_v46 }
  0x8b   : > { %925 = vmatpush1.bf16.msra.mxu0 %v1519_v47  ;;  %863 = vmatprep.subr.bf16.mxu1 %v1520_v48 }
  0x8c   : > { %926 = vmatprep.subr.bf16.mxu0 %v1522_v50 }
  0x8e   : > { %864 = vmatpush1.bf16.msra.mxu1 %v1524_v52 }
  0x8f   : > { %927 = vmatpush1.bf16.msra.mxu0 %v1525_v53  ;;  %865 = vmatprep.subr.bf16.mxu1 %v1526_v54 }
  0x90   : > { %928 = vmatprep.subr.bf16.mxu0 %v1528_v55 }
  0x92   : > { %866 = vmatpush1.bf16.msra.mxu1 %v1530_v56 }
  0x93   : > { %929 = vmatpush1.bf16.msra.mxu0 %v1531_v57  ;;  %867 = vmatprep.subr.bf16.mxu1 %v1532_v58 }
  0x94   : > { %930 = vmatprep.subr.bf16.mxu0 %v1534_v59 }
  0x96   : > { %868 = vmatpush1.bf16.msra.mxu1 %v1536_v60 }
  0x97   : > { %931 = vmatpush1.bf16.msra.mxu0 %v1537_v61  ;;  %869 = vmatprep.subr.bf16.mxu1 %v1538_v62 }
  0x98   : > { %932 = vmatprep.subr.bf16.mxu0 %v1540_v63 }
  0x9a   : > { %870 = vmatpush1.bf16.msra.mxu1 %v1542_v0 }
  0x9b   : > { %933 = vmatpush1.bf16.msra.mxu0 %v1543_v1  ;;  %1311 = vmatprep.subr.bf16.mxu1 %v1552_v2 }
  0x9c   : > { %965 = vmatprep.subr.bf16.mxu0 %v1552_v2 }
  0x9d   : > { %872 = vmatmul.mubr.bf16.vlgmr.msra.gmra.mrb[0].mxu1 %v1544_v3 }
  0x9e   : > { %935 = vmatmul.mubr.bf16.vlgmr.msra.gmra.mrb[0].mxu0 %v1547_v4  ;;  %1319 = vmatpush1.bf16.msra.mxu1 %v1550_v5 }
  0x9f   : > { %966 = vmatpush1.bf16.msra.mxu0 %v1550_v5  ;;  %1312 = vmatprep.subr.bf16.mxu1 %v1555_v6 }
  0xa0   : > { %967 = vmatprep.subr.bf16.mxu0 %v1555_v6  ;;  %881 = vmatprep.mubr.bf16.mxu1 %v1559_v7 }
  0xa1   : > { %944 = vmatprep.mubr.bf16.mxu0 %v1565_v8 }
  0xa2   : > { %1320 = vmatpush1.bf16.msra.mxu1 %v1553_v9 }
  0xa3   : > { %968 = vmatpush1.bf16.msra.mxu0 %v1553_v9  ;;  %1313 = vmatprep.subr.bf16.mxu1 %v1558_v10 }
  0xa4   : > { %969 = vmatprep.subr.bf16.mxu0 %v1558_v10 }
  0xa5   : > { %882 = vmatmul.mubr.bf16.gmra.mrb[4].mxu1 %v1564_v11 }
  0xa6   : > { %945 = vmatmul.mubr.bf16.gmra.mrb[4].mxu0 %v1567_v12  ;;  %1321 = vmatpush1.bf16.msra.mxu1 %v1556_v13 }
  0xa7   : > { %970 = vmatpush1.bf16.msra.mxu0 %v1556_v13  ;;  %1314 = vmatprep.subr.bf16.mxu1 %v1563_v14 }
  0xa8   : > { %971 = vmatprep.subr.bf16.mxu0 %v1563_v14  ;;  %891 = vmatprep.mubr.bf16.mxu1 %v1571_v15 }
  0xa9   : > { %954 = vmatprep.mubr.bf16.mxu0 %v1577_v16 }
  0xaa   : > { %1322 = vmatpush1.bf16.msra.mxu1 %v1561_v17 }
  0xab   : > { %972 = vmatpush1.bf16.msra.mxu0 %v1561_v17  ;;  %1315 = vmatprep.subr.bf16.mxu1 %v1570_v18 }
  0xac   : > { %973 = vmatprep.subr.bf16.mxu0 %v1570_v18 }
  0xad   : > { %892 = vmatmul.mubr.bf16.gmra.mrb[8].mxu1 %v1576_v19 }
  0xae   : > { %955 = vmatmul.mubr.bf16.gmra.mrb[8].mxu0 %v1579_v20  ;;  %1323 = vmatpush1.bf16.msra.mxu1 %v1568_v21 }
  0xaf   : > { %974 = vmatpush1.bf16.msra.mxu0 %v1568_v21  ;;  %1316 = vmatprep.subr.bf16.mxu1 %v1575_v22 }
  0xb0   : > { %975 = vmatprep.subr.bf16.mxu0 %v1575_v22  ;;  %997 = vmatprep.mubr.bf16.mxu0 %v1742_v25 }
  0xb1   : > { %1007 = vmatprep.mubr.bf16.mxu1 %v1742_v25 }
  0xb2   : > { %1324 = vmatpush1.bf16.msra.mxu1 %v1573_v23 }
  0xb3   : > { %976 = vmatpush1.bf16.msra.mxu0 %v1573_v23  ;;  %1317 = vmatprep.subr.bf16.mxu1 %v1582_v24 }
  0xb4   : > { %977 = vmatprep.subr.bf16.mxu0 %v1582_v24 }
  0xb6   : > { %1325 = vmatpush1.bf16.msra.mxu1 %v1580_v26 }
  0xb7   : > { %978 = vmatpush1.bf16.msra.mxu0 %v1580_v26  ;;  %1318 = vmatprep.subr.bf16.mxu1 %v1585_v27 }
  0xb8   : > { %979 = vmatprep.subr.bf16.mxu0 %v1585_v27 }
  0xba   : > { %1326 = vmatpush1.bf16.msra.mxu1 %v1583_v28 }
  0xbb   : > { %980 = vmatpush1.bf16.msra.mxu0 %v1583_v28 }
  0xbd   : > { %1008 = vmatmul.mubr.bf16.vlgmr.msra.gmra.mrb[12].mxu1 %v1587_v30 }
  0xbe   : > { %998 = vmatmul.mubr.bf16.vlgmr.msra.gmra.mrb[0].mxu0 %v1586_v29  ;;  %1017 = vmatprep.mubr.bf16.mxu1 %v1742_v25 }
  0xc5   : > { %1018 = vmatmul.mubr.bf16.gmra.mrb[16].mxu1 %v1588_v31 }
 0x170   : > { %v873_v34 = vpop.f32.mrb[0].mxu1 }
 0x171   : > { %v875_v35 = vpop.f32.mrb[1].mxu1  ;;  %v874_v11 = vadd.f32 %v873_v34, %v354_v41 }
 0x172   : > { %v877_v36 = vpop.f32.mrb[2].mxu1  ;;  %v876_v12 = vadd.f32 %v875_v35, %v358_v42 }
 0x173   : > { %v879_v38 = vpop.f32.mrb[3].mxu1  ;;  %v878_v19 = vadd.f32 %v877_v36, %v354_v41 }
 0x174   : > { %v880_v20 = vadd.f32 %v879_v38, %v358_v42 }
 0x178   : > { %v883_v43 = vpop.f32.mrb[4].mxu1 }
 0x179   : > { %v946_v44 = vpop.f32.mrb[4].mxu0  ;;  %v884_v45 = vadd.f32 %v883_v43, %v354_v41  ;;  %v885_v46 = vpop.f32.mrb[5].mxu1 }
 0x17a   : > { %v948_v47 = vpop.f32.mrb[5].mxu0  ;;  %v886_v48 = vadd.f32 %v885_v46, %v358_v42  ;;  %v887_v49 = vpop.f32.mrb[6].mxu1 }
 0x17b   : > { %v950_v50 = vpop.f32.mrb[6].mxu0  ;;  %v888_v51 = vadd.f32 %v887_v49, %v354_v41  ;;  %v947_v52 = vadd.f32 %v946_v44, %v884_v45  ;;  %v889_v53 = vpop.f32.mrb[7].mxu1 }
 0x17c   : > { %v952_v54 = vpop.f32.mrb[7].mxu0  ;;  %v890_v55 = vadd.f32 %v889_v53, %v358_v42  ;;  %v949_v56 = vadd.f32 %v948_v47, %v886_v48 }
 0x17d   : > { %v951_v57 = vadd.f32 %v950_v50, %v888_v51 }
 0x17e   : > { %v953_v58 = vadd.f32 %v952_v54, %v890_v55 }
 0x180   : > { %v893_v59 = vpop.f32.mrb[8].mxu1 }
 0x181   : > { %v956_v60 = vpop.f32.mrb[8].mxu0  ;;  %v894_v61 = vadd.f32 %v893_v59, %v354_v41  ;;  %v895_v62 = vpop.f32.mrb[9].mxu1 }
 0x182   : > { %v958_v63 = vpop.f32.mrb[9].mxu0  ;;  %v896_v0 = vadd.f32 %v895_v62, %v358_v42  ;;  %v897_v1 = vpop.f32.mrb[10].mxu1 }
 0x183   : > { %v960_v2 = vpop.f32.mrb[10].mxu0  ;;  %v898_v3 = vadd.f32 %v897_v1, %v354_v41  ;;  %v957_v4 = vadd.f32 %v956_v60, %v894_v61  ;;  %v899_v5 = vpop.f32.mrb[11].mxu1 }
 0x184   : > { %v962_v6 = vpop.f32.mrb[11].mxu0  ;;  %v900_v7 = vadd.f32 %v899_v5, %v358_v42  ;;  %v959_v8 = vadd.f32 %v958_v63, %v896_v0 }
 0x185   : > { %v2018_v9 = vadd.f32 %v960_v2, %v898_v3 }
 0x186   : > { %v2020_v10 = vadd.f32 %v962_v6, %v900_v7 }
 0x190   : > { %v1009_v14 = vpop.f32.mrb[12].mxu1 }
 0x191   : > { %v999_v13 = vpop.f32.mrb[0].mxu0  ;;  %v1010_v16 = vadd.f32 %v1009_v14, %v947_v52  ;;  %v1011_v18 = vpop.f32.mrb[13].mxu1 }
 0x192   : > { %v1328_v15 = vadd.f32 %v999_v13, %v874_v11  ;;  %v1001_v17 = vpop.f32.mrb[1].mxu0  ;;  %v1012_v22 = vadd.f32 %v1011_v18, %v949_v56  ;;  %v1013_v24 = vpop.f32.mrb[14].mxu1 }
 0x193   : > { %v1330_v21 = vadd.f32 %v1001_v17, %v876_v12  ;;  %v1003_v23 = vpop.f32.mrb[2].mxu0  ;;  %vm1032_vm1 = vcmp.ge.f32.partialorder %v1010_v16, 0.0  ;;  %v1044_v26 = vmul.f32 0.1, %v1010_v16  ;;  %v1014_v32 = vadd.f32 %v1013_v24, %v951_v57  ;;  %v1015_v34 = vpop.f32.mrb[15].mxu1 }
 0x194   : > { %vm1028_vm0 = vcmp.ge.f32.partialorder %v1328_v15, 0.0  ;;  %v1040_v25 = vmul.f32 0.1, %v1328_v15  ;;  %vm1033_vm3 = vcmp.ge.f32.partialorder %v1012_v22, 0.0  ;;  %v1045_v28 = vmul.f32 0.1, %v1012_v22 }
 0x195   : > { %vm1029_vm2 = vcmp.ge.f32.partialorder %v1330_v21, 0.0  ;;  %v1041_v27 = vmul.f32 0.1, %v1330_v21  ;;  %v1056_v30 = vsel %vm1032_vm1, %v1010_v16, %v1044_v26  ;;  %v1332_v31 = vadd.f32 %v1003_v23, %v878_v19  ;;  %v1005_v33 = vpop.f32.mrb[3].mxu0 }
 0x196   : > { %v1052_v29 = vsel %vm1028_vm0, %v1328_v15, %v1040_v25  ;;  %1068 = vst [vmem:[%s2023_s11 + $0x20] sm:$0xff] %v1056_v30  ;;  %v1057_v36 = vsel %vm1033_vm3, %v1012_v22, %v1045_v28  ;;  %v1334_v37 = vadd.f32 %v1005_v33, %v880_v20  ;;  %v1016_v38 = vadd.f32 %v1015_v34, %v953_v58 }
 0x197   : > { %1064 = vst [vmem:[%s2023_s11] sm:$0xff] %v1052_v29  ;;  %v1053_v35 = vsel %vm1029_vm2, %v1330_v21, %v1041_v27  ;;  %1069 = vst [vmem:[%s2023_s11 + $0x28] sm:$0xff] %v1057_v36  ;;  %vm1030_vm4 = vcmp.ge.f32.partialorder %v1332_v31, 0.0  ;;  %v1042_v39 = vmul.f32 0.1, %v1332_v31  ;;  %vm1034_vm5 = vcmp.ge.f32.partialorder %v1014_v32, 0.0 }
 0x198   : > { %1065 = vst [vmem:[%s2023_s11 + $0x8] sm:$0xff] %v1053_v35  ;;  %v1046_v40 = vmul.f32 0.1, %v1014_v32  ;;  %vm1031_vm6 = vcmp.ge.f32.partialorder %v1334_v37, 0.0  ;;  %v1043_v41 = vmul.f32 0.1, %v1334_v37 }
 0x199   : > { %vm1035_vm7 = vcmp.ge.f32.partialorder %v1016_v38, 0.0  ;;  %v1047_v42 = vmul.f32 0.1, %v1016_v38  ;;  %v1054_v43 = vsel %vm1030_vm4, %v1332_v31, %v1042_v39  ;;  %v1019_v45 = vpop.f32.mrb[16].mxu1 }
 0x19a   : > { %v1058_v44 = vsel %vm1034_vm5, %v1014_v32, %v1046_v40  ;;  %1066 = vst [vmem:[%s2023_s11 + $0x10] sm:$0xff] %v1054_v43  ;;  %v1055_v46 = vsel %vm1031_vm6, %v1334_v37, %v1043_v41  ;;  %v1020_v48 = vadd.f32 %v1019_v45, %v957_v4  ;;  %v1021_v49 = vpop.f32.mrb[17].mxu1 }
 0x19b   : > { %1070 = vst [vmem:[%s2023_s11 + $0x30] sm:$0xff] %v1058_v44  ;;  %v1059_v47 = vsel %vm1035_vm7, %v1016_v38, %v1047_v42  ;;  %1067 = vst [vmem:[%s2023_s11 + $0x18] sm:$0xff] %v1055_v46  ;;  %v1022_v50 = vadd.f32 %v1021_v49, %v959_v8  ;;  %v1023_v51 = vpop.f32.mrb[18].mxu1 }
 0x19c   : > { %1071 = vst [vmem:[%s2023_s11 + $0x38] sm:$0xff] %v1059_v47  ;;  %vm1036_vm8 = vcmp.ge.f32.partialorder %v1020_v48, 0.0  ;;  %v1048_v52 = vmul.f32 0.1, %v1020_v48  ;;  %v1024_v53 = vadd.f32 %v1023_v51, %v2018_v9  ;;  %v1025_v54 = vpop.f32.mrb[19].mxu1 }
 0x19d   : > { %vm1037_vm9 = vcmp.ge.f32.partialorder %v1022_v50, 0.0  ;;  %v1049_v55 = vmul.f32 0.1, %v1022_v50  ;;  %v1026_v56 = vadd.f32 %v1025_v54, %v2020_v10 }
 0x19e   : > { %v1060_v57 = vsel %vm1036_vm8, %v1020_v48, %v1048_v52  ;;  %vm1038_vm10 = vcmp.ge.f32.partialorder %v1024_v53, 0.0  ;;  %v1050_v58 = vmul.f32 0.1, %v1024_v53 }
 0x19f   : > { %1072 = vst [vmem:[%s2023_s11 + $0x40] sm:$0xff] %v1060_v57  ;;  %v1061_v59 = vsel %vm1037_vm9, %v1022_v50, %v1049_v55  ;;  %vm1039_vm11 = vcmp.ge.f32.partialorder %v1026_v56, 0.0  ;;  %v1051_v60 = vmul.f32 0.1, %v1026_v56 }
 0x1a0   : > { %1073 = vst [vmem:[%s2023_s11 + $0x48] sm:$0xff] %v1061_v59  ;;  %v1062_v61 = vsel %vm1038_vm10, %v1024_v53, %v1050_v58 }
 0x1a1   : > { %1074 = vst [vmem:[%s2023_s11 + $0x50] sm:$0xff] %v1062_v61  ;;  %v1063_v62 = vsel %vm1039_vm11, %v1026_v56, %v1051_v60 }
 0x1a2   : > { %1075 = vst [vmem:[%s2023_s11 + $0x58] sm:$0xff] %v1063_v62 }
 0x1a3   : > { %1660 = shalt.err (!%p1657_p0)
}
 0x1a4   : > { %s1661_s4 = scalar_lea.hbm %s2040_s27, 1536  ;;  %s1665_s25 = scalar_lea.hbm %s2098_s3, 3072 }
 0x1a5   : > { %p1662_p2 = scmp.ne.s32.totalorder %s2040_s27, %s1661_s4  ;;  %p1666_p5 = scmp.lt.u32.totalorder %s2040_s27, %s2098_s3 }
 0x1a6   : > { %p1667_p8 = scmp.lt.u32.totalorder %s1665_s25, %s1661_s4  ;;  %p1669_p11 = scmp.lt.u32.totalorder %s1661_s4, %s2040_s27 }
 0x1a7   : > { %p1663_p7 = pnand %p1662_p2, %p2117_p13 }
 0x1a8   : > { %p1668_p9 = por %p1667_p8, %p1666_p5 }
 0x1a9   : > { %p1664_p12 = pneg %p1663_p7 }
 0x1aa   : > { %p1670_p4 = por %p1669_p11, %p1668_p9 }
 0x1ac   : > { %p1671_p1 = pnand %p1670_p4, %p1664_p12 }
 0x1ae   : > { %1674 = shalt.err (!%p1671_p1)
}
 0x1af   : > { %s1744_s11 = smov 256   ;;  %s1745_s19 = smov 512  }
 0x1b0   : > { %s1746_s10 = smov 16  }
 0x1b1   : > { %1372 = dma.vmem_to_hbm [thread:$0]  (%p2117_p13), %s2043_s5, 1536, %s2040_s27, %s1077_s21, %s1744_s11, %s1745_s19, %s1746_s10  }
 0x1b2 PF: > { %s1108_s15 = sand.u32 1, %s1713_s12   ;;  %p2118_p10 = scmp.ne.s32.totalorder %s2109_s24, 0 }
 0x1b3   : > { %p2119_p3 = scmp.ge.s32.totalorder %s1733_s17, 2  ;;  %s1109_s26 = scalar_lea.sflag [#allocation4], %s1108_s15 }
 0x1b5   : > { %p1383_p6 = pnand %p2119_p3, %p2118_p10 }
 0x1b7   : > { %1708 = dma.done.wait (!%p1383_p6), %s1109_s26, 1536  }
 0x1b8   : > { %1710 = vsyncadd (!%p1383_p6), %s1109_s26, 4294965760  ;;  %s20_s17 = sadd.s32 1, %s1733_s17   ;;  %s2120_s12 = smov %s1717_s13 }
 0x1b9   : > { %p17_p0 = scmp.ge.s32.totalorder %s20_s17, 4   ;;  %s2121_s13 = smov %s1721_s14 }
 0x1ba   : > { %s2122_s14 = smov %s1885_s18  ;;  %s2123_s15 = smov %s1729_s16 }
 0x1bb   : > { %s2124_s16 = smov %s2126_s30  ;;  %19 = sbr.rel (!%p17_p0) target bundleno = 7 (0x7), region = 86 }
 0x1c2   :  { %1114 = vsyncpa [#allocation3], 1 }
 0x1c3   :  { %1116 = vsyncpa [#allocation3 + $0x1], 1 }
 0x1c4   :  { %1117 = vsyncpa [#allocation6], 1 }
 0x1c5   :  { %1119 = vsyncpa [#allocation6 + $0x1], 1 }
 0x1c6   :  { %1120 = vsyncpa [#allocation4], 1 }
 0x1c7   :  { %1122 = vsyncpa [#allocation4 + $0x1], 1 }

</bundles_post_ra>
